<compile_context>
chip_gen: v6e
topology: v6e:2x2x1
jax: 0.10.0
libtpu: 0.0.40
codegen_flags: <defaults>
</compile_context>

<pallas_src>
import functools

import jax
import jax.numpy as jnp
from jax import lax
from jax.experimental import pallas as pl
from jax.experimental.pallas import tpu as pltpu


def _round_up(x, m):
    return (x + m - 1) // m * m


# ---------------------------------------------------------------------------
# Kernel 1: sequential RNN recurrence over pre-projected activations.
# ---------------------------------------------------------------------------
def rnn_recurrence_kernel(xw_ref, whh_ref, hT_ref, h_scr):
    """One grid step == one (batch-tile, time-chunk).

    xw_ref  : (Tc, TB, Hp) f32   pre-projected x@W_ih + b for this chunk
    whh_ref : (Hp, Hp)     bf16/f32  hidden->hidden weight (right-multiply form)
    hT_ref  : (TB, Hp)     f32   final hidden state (written on last chunk only)
    h_scr   : (TB, Hp)     f32   hidden-state carry across the time-chunk axis
    """
    c = pl.program_id(1)  # time-chunk index (axis 1, "arbitrary")

    @pl.when(c == 0)
    def _():
        h_scr[...] = jnp.zeros_like(h_scr)

    tc = xw_ref.shape[0]  # static chunk length

    def step(i, h):
        # Only the matmul operands are cast to the low-precision dtype;
        # accumulation, the add and tanh stay f32 (v5e has no bf16 VPU/EUP).
        hh = jnp.dot(h.astype(whh_ref.dtype), whh_ref[...],
                     preferred_element_type=jnp.float32)
        return jnp.tanh(xw_ref[i] + hh)

    # Unrolled so the LLO scheduler sees the whole chunk.
    h = lax.fori_loop(0, tc, step, h_scr[...], unroll=True)
    h_scr[...] = h

    @pl.when(c == pl.num_programs(1) - 1)
    def _():
        hT_ref[...] = h


# ---------------------------------------------------------------------------
# Kernel 2: logits = h_T @ W_fc + b_fc, tiled over the vocab dimension.
# ---------------------------------------------------------------------------
def fc_kernel(h_ref, w_ref, b_ref, out_ref):
    """
    h_ref   : (Bp, Hp) bf16/f32
    w_ref   : (Hp, TV) bf16/f32
    b_ref   : (1, TV)  f32
    out_ref : (Bp, TV) f32
    """
    out_ref[...] = (
        jnp.dot(h_ref[...], w_ref[...], preferred_element_type=jnp.float32)
        + b_ref[...]
    )


# ---------------------------------------------------------------------------
# Wrapper
# ---------------------------------------------------------------------------
def rnn_language_model(tokens, params, *, time_chunk=8,
                       matmul_dtype=jnp.bfloat16):
    """tokens: (B, S) int32 -> logits (B, V)."""
    emb_table = params["embedding"]          # (V, E)
    w_ih_t = params["w_ih_t"]                # (E, H)  (x @ w_ih_t)
    w_hh_t = params["w_hh_t"]                # (H, H)
    b_rnn = params["b_rnn"]                  # (1, H)  (b_ih + b_hh)
    w_fc_t = params["w_fc_t"]                # (H, V)
    b_fc = params["b_fc"]                    # (1, V)

    B, S = tokens.shape
    V, E = emb_table.shape
    H = w_hh_t.shape[0]

    # Hardware-friendly padded sizes (sublane=8, lane=128).  Padded hidden
    # units stay exactly zero through the recurrence (tanh(0)=0) and padded
    # fc rows/bias entries are zero, so padding is a semantic no-op.
    Bp = _round_up(B, 8)
    Hp = _round_up(H, 128)
    Vp = _round_up(V, 128)

    # ---- glue (plain XLA): embedding gather + hoisted input projection ----
    # TODO(synk): the embedding gather is data-dependent; done with a plain
    # XLA gather rather than a Pallas kernel.
    tokens_p = jnp.pad(tokens, ((0, Bp - B), (0, 0)))        # (Bp, S)
    emb_tm = emb_table[tokens_p.T]                           # (S, Bp, E) time-major
    w_ih_p = jnp.pad(w_ih_t, ((0, 0), (0, Hp - H))).astype(matmul_dtype)
    b_rnn_p = jnp.pad(b_rnn, ((0, 0), (0, Hp - H)))          # f32
    # One big (S*Bp, E) @ (E, Hp) matmul — removed from the serial path.
    xw = (
        jnp.dot(emb_tm.astype(matmul_dtype).reshape(S * Bp, E), w_ih_p,
                preferred_element_type=jnp.float32)
        + b_rnn_p
    ).reshape(S, Bp, Hp)

    # Chunk the time axis; LEFT-pad with zeros: h0 = 0 and tanh(0 + 0@W) = 0,
    # so leading zero chunks leave the hidden state exactly at zero.
    Tc = min(time_chunk, _round_up(S, 1))
    S_p = _round_up(S, Tc)
    xw = jnp.pad(xw, ((S_p - S, 0), (0, 0), (0, 0)))         # (S_p, Bp, Hp)
    NC = S_p // Tc

    # Two parallel batch tiles when possible so v7x's second TensorCore has
    # work; still correct (and cheap) on single-core v5e/v6e.
    NB = 2 if (Bp % 16 == 0) else 1
    TB = Bp // NB

    w_hh_p = jnp.pad(w_hh_t, ((0, Hp - H), (0, Hp - H))).astype(matmul_dtype)

    h_T = pl.pallas_call(
        rnn_recurrence_kernel,
        out_shape=jax.ShapeDtypeStruct((Bp, Hp), jnp.float32),
        grid_spec=pltpu.PrefetchScalarGridSpec(
            num_scalar_prefetch=0,
            grid=(NB, NC),
            in_specs=[
                # one (Tc, TB, Hp) chunk of pre-projected activations per step
                pl.BlockSpec((Tc, TB, Hp), lambda b, c: (c, b, 0)),
                # W_hh resident across the whole grid (constant index map);
                # it is the only weight held during the recurrence.
                pl.BlockSpec((Hp, Hp), lambda b, c: (0, 0)),
            ],
            out_specs=pl.BlockSpec((TB, Hp), lambda b, c: (b, 0)),
            scratch_shapes=[pltpu.VMEM((TB, Hp), jnp.float32)],
        ),
        compiler_params=pltpu.CompilerParams(
            dimension_semantics=("parallel", "arbitrary"),
        ),
    )(xw, w_hh_p)

    # ---- Kernel 2: fc projection, tiled over V (kept OUT of the recurrence
    # so the (H, V) weight never occupies VMEM while the sequence runs) ----
    w_fc_p = jnp.pad(w_fc_t, ((0, Hp - H), (0, Vp - V))).astype(matmul_dtype)
    b_fc_p = jnp.pad(b_fc, ((0, 0), (0, Vp - V)))            # f32
    TV = 512 if Vp % 512 == 0 else 128
    NV = Vp // TV

    logits_p = pl.pallas_call(
        fc_kernel,
        out_shape=jax.ShapeDtypeStruct((Bp, Vp), jnp.float32),
        grid_spec=pltpu.PrefetchScalarGridSpec(
            num_scalar_prefetch=0,
            grid=(NV,),
            in_specs=[
                pl.BlockSpec((Bp, Hp), lambda j: (0, 0)),
                pl.BlockSpec((Hp, TV), lambda j: (0, j)),
                pl.BlockSpec((1, TV), lambda j: (0, j)),
            ],
            out_specs=pl.BlockSpec((Bp, TV), lambda j: (0, j)),
        ),
        compiler_params=pltpu.CompilerParams(
            dimension_semantics=("parallel",),
        ),
    )(h_T.astype(matmul_dtype), w_fc_p, b_fc_p)

    return logits_p[:B, :V]


# ---------------------------------------------------------------------------
# Params & pure-JAX reference (mirrors nn.Embedding -> nn.RNN(tanh) -> nn.Linear
# with the same matmul-operand dtype as the kernel path).
# ---------------------------------------------------------------------------
def init_params(key, vocab_size, embed_size, hidden_size):
    k = jax.random.split(key, 7)
    s = 1.0 / jnp.sqrt(hidden_size)
    return {
        "embedding": jax.random.normal(k[0], (vocab_size, embed_size), jnp.float32),
        # stored transposed: x @ W_ih^T == x @ w_ih_t
        "w_ih_t": jax.random.uniform(k[1], (embed_size, hidden_size), jnp.float32, -s, s),
        "w_hh_t": jax.random.uniform(k[2], (hidden_size, hidden_size), jnp.float32, -s, s),
        "b_rnn": (jax.random.uniform(k[3], (1, hidden_size), jnp.float32, -s, s)
                  + jax.random.uniform(k[4], (1, hidden_size), jnp.float32, -s, s)),
        "w_fc_t": jax.random.uniform(k[5], (hidden_size, vocab_size), jnp.float32, -s, s),
        "b_fc": jax.random.uniform(k[6], (1, vocab_size), jnp.float32, -s, s),
    }


def reference_forward(tokens, params, *, matmul_dtype=jnp.bfloat16):
    emb = params["embedding"][tokens]                        # (B, S, E)
    B = tokens.shape[0]
    H = params["w_hh_t"].shape[0]
    xw = (jnp.dot(emb.astype(matmul_dtype),
                  params["w_ih_t"].astype(matmul_dtype),
                  preferred_element_type=jnp.float32)
          + params["b_rnn"])                                 # (B, S, H)
    w_hh = params["w_hh_t"].astype(matmul_dtype)

    def step(h, x_t):
        hh = jnp.dot(h.astype(matmul_dtype), w_hh, preferred_element_type=jnp.float32)
        return jnp.tanh(x_t + hh), None

    h_T, _ = lax.scan(step, jnp.zeros((B, H), jnp.float32),
                      jnp.transpose(xw, (1, 0, 2)))
    return (jnp.dot(h_T.astype(matmul_dtype),
                    params["w_fc_t"].astype(matmul_dtype),
                    preferred_element_type=jnp.float32)
            + params["b_fc"])


if __name__ == "__main__":
    vocab_size, embed_size, hidden_size = 64, 32, 32
    batch, seq = 12, 10   # exercises batch/hidden/vocab padding, time-chunking
                          # (S=10 -> 2 chunks of 8) and 2 batch tiles.

    key = jax.random.PRNGKey(0)
    pkey, tkey = jax.random.split(key)
    params = init_params(pkey, vocab_size, embed_size, hidden_size)
    tokens = jax.random.randint(tkey, (batch, seq), 0, vocab_size, dtype=jnp.int32)

    # Check both the f32 path (tight tolerance) and the bf16 production path.
    for dtype, tol in ((jnp.float32, 1e-3), (jnp.bfloat16, 2e-2)):
        fwd = jax.jit(functools.partial(rnn_language_model, matmul_dtype=dtype))
        logits = fwd(tokens, params)
        jax.block_until_ready(logits)
        ref = reference_forward(tokens, params, matmul_dtype=dtype)
        assert logits.shape == (batch, vocab_size)
        assert jnp.allclose(logits, ref, atol=tol, rtol=tol), \
            f"mismatch vs reference ({dtype.__name__})"

    print("KERNEL_OK")
</pallas_src>

<mosaic_0001>
module attributes {stable_mosaic.version = 11 : i64} {
  func.func @fc_kernel(%arg0: i32, %arg1: memref<16x128xf32, #tpu.memory_space<vmem>>, %arg2: memref<128x128xf32, #tpu.memory_space<vmem>>, %arg3: memref<1x128xf32, #tpu.memory_space<vmem>>, %arg4: memref<16x128xf32, #tpu.memory_space<vmem>>) attributes {dimension_semantics = [#tpu.dimension_semantics<parallel>], iteration_bounds = array<i64: 1>, scalar_prefetch = 0 : i64, scratch_operands = 0 : i64, tpu.core_type = #tpu.core_type<tc>, window_params = [{pipeline_mode = #tpu.pipeline_mode<synchronous>, transform_indices = @transform_0, window_bounds = array<i64: 16, 128>}, {transform_indices = @transform_1, window_bounds = array<i64: 128, 128>}, {transform_indices = @transform_2, window_bounds = array<i64: 1, 128>}, {transform_indices = @transform_3, window_bounds = array<i64: 16, 128>}]} {
    %c0 = arith.constant 0 : index
    %c0_0 = arith.constant 0 : index
    %0 = vector.load %arg1[%c0, %c0_0] : memref<16x128xf32, #tpu.memory_space<vmem>>, vector<16x128xf32>
    %c0_1 = arith.constant 0 : index
    %c0_2 = arith.constant 0 : index
    %1 = vector.load %arg2[%c0_1, %c0_2] : memref<128x128xf32, #tpu.memory_space<vmem>>, vector<128x128xf32>
    %cst = arith.constant dense<0.000000e+00> : vector<16x128xf32>
    %2 = tpu.matmul %0, %1, %cst {dimension_numbers = #tpu.dot_dimension_numbers<[1], [0], [0], [1], [0, 0, 1, 1], [], []>} : vector<16x128xf32>, vector<128x128xf32>, vector<16x128xf32> -> vector<16x128xf32>
    %c0_3 = arith.constant 0 : index
    %c0_4 = arith.constant 0 : index
    %3 = vector.load %arg3[%c0_3, %c0_4] : memref<1x128xf32, #tpu.memory_space<vmem>>, vector<1x128xf32>
    %4 = vector.broadcast %3 : vector<1x128xf32> to vector<16x128xf32>
    %5 = arith.addf %2, %4 : vector<16x128xf32>
    %c0_5 = arith.constant 0 : index
    %c0_6 = arith.constant 0 : index
    %6 = vector.load %arg4[%c0_5, %c0_6] : memref<16x128xf32, #tpu.memory_space<vmem>>, vector<16x128xf32>
    tpu.vector_store %arg4[%c0_5, %c0_6], %5 {strides = array<i32>} : memref<16x128xf32, #tpu.memory_space<vmem>>, vector<16x128xf32>,
    return
  }
  func.func @transform_0(%arg0: i32) -> (i32, i32) {
    %c0_i32 = arith.constant 0 : i32
    %c0_i32_0 = arith.constant 0 : i32
    %c0_i32_1 = arith.constant 0 : i32
    return %c0_i32, %c0_i32_0 : i32, i32
  }
  func.func @transform_1(%arg0: i32) -> (i32, i32) {
    %c0_i32 = arith.constant 0 : i32
    %c0_i32_0 = arith.constant 0 : i32
    return %c0_i32, %arg0 : i32, i32
  }
  func.func @transform_2(%arg0: i32) -> (i32, i32) {
    %c0_i32 = arith.constant 0 : i32
    %c0_i32_0 = arith.constant 0 : i32
    return %c0_i32, %arg0 : i32, i32
  }
  func.func @transform_3(%arg0: i32) -> (i32, i32) {
    %c0_i32 = arith.constant 0 : i32
    %c0_i32_0 = arith.constant 0 : i32
    return %c0_i32, %arg0 : i32, i32
  }
}

module attributes {stable_mosaic.version = 11 : i64} {
  func.func @rnn_recurrence_kernel(%arg0: i32, %arg1: i32, %arg2: memref<8x8x128xf32, #tpu.memory_space<vmem>>, %arg3: memref<128x128xf32, #tpu.memory_space<vmem>>, %arg4: memref<8x128xf32, #tpu.memory_space<vmem>>, %arg5: memref<8x128xf32, #tpu.memory_space<vmem>>) attributes {dimension_semantics = [#tpu.dimension_semantics<parallel>, #tpu.dimension_semantics<arbitrary>], iteration_bounds = array<i64: 2, 2>, scalar_prefetch = 0 : i64, scratch_operands = 1 : i64, tpu.core_type = #tpu.core_type<tc>, window_params = [{transform_indices = @transform_0, window_bounds = array<i64: 8, 8, 128>}, {pipeline_mode = #tpu.pipeline_mode<synchronous>, transform_indices = @transform_1, window_bounds = array<i64: 128, 128>}, {transform_indices = @transform_2, window_bounds = array<i64: 8, 128>}]} {
    %c0_i32 = arith.constant 0 : i32
    %0 = arith.cmpi eq, %arg1, %c0_i32 : i32
    %1 = arith.extui %0 : i1 to i32
    %c0_i32_0 = arith.constant 0 : i32
    %2 = arith.cmpi ne, %1, %c0_i32_0 : i32
    scf.if %2 {
      %cst_46 = arith.constant 0.000000e+00 : f32
      %64 = vector.broadcast %cst_46 : f32 to vector<8x128xf32>
      %c0_47 = arith.constant 0 : index
      %c0_48 = arith.constant 0 : index
      %65 = vector.load %arg5[%c0_47, %c0_48] : memref<8x128xf32, #tpu.memory_space<vmem>>, vector<8x128xf32>
      tpu.vector_store %arg5[%c0_47, %c0_48], %64 {strides = array<i32>} : memref<8x128xf32, #tpu.memory_space<vmem>>, vector<8x128xf32>,
    } else {
    }
    %c0 = arith.constant 0 : index
    %c0_1 = arith.constant 0 : index
    %3 = vector.load %arg5[%c0, %c0_1] : memref<8x128xf32, #tpu.memory_space<vmem>>, vector<8x128xf32>
    %c0_i32_2 = arith.constant 0 : i32
    %c0_3 = arith.constant 0 : index
    %c0_4 = arith.constant 0 : index
    %4 = vector.load %arg3[%c0_3, %c0_4] : memref<128x128xf32, #tpu.memory_space<vmem>>, vector<128x128xf32>
    %cst = arith.constant dense<0.000000e+00> : vector<8x128xf32>
    %5 = tpu.matmul %3, %4, %cst {dimension_numbers = #tpu.dot_dimension_numbers<[1], [0], [0], [1], [0, 0, 1, 1], [], []>} : vector<8x128xf32>, vector<128x128xf32>, vector<8x128xf32> -> vector<8x128xf32>
    %6 = arith.index_cast %c0_i32_2 : i32 to index
    %c0_5 = arith.constant 0 : index
    %c0_6 = arith.constant 0 : index
    %7 = vector.load %arg2[%6, %c0_5, %c0_6] : memref<8x8x128xf32, #tpu.memory_space<vmem>>, vector<1x8x128xf32>
    %8 = vector.shape_cast %7 : vector<1x8x128xf32> to vector<8x128xf32>
    %9 = arith.addf %8, %5 : vector<8x128xf32>
    %10 = math.tanh %9 : vector<8x128xf32>
    %c1_i32 = arith.constant 1 : i32
    %c0_7 = arith.constant 0 : index
    %c0_8 = arith.constant 0 : index
    %11 = vector.load %arg3[%c0_7, %c0_8] : memref<128x128xf32, #tpu.memory_space<vmem>>, vector<128x128xf32>
    %cst_9 = arith.constant dense<0.000000e+00> : vector<8x128xf32>
    %12 = tpu.matmul %10, %11, %cst_9 {dimension_numbers = #tpu.dot_dimension_numbers<[1], [0], [0], [1], [0, 0, 1, 1], [], []>} : vector<8x128xf32>, vector<128x128xf32>, vector<8x128xf32> -> vector<8x128xf32>
    %13 = arith.index_cast %c1_i32 : i32 to index
    %c0_10 = arith.constant 0 : index
    %c0_11 = arith.constant 0 : index
    %14 = vector.load %arg2[%13, %c0_10, %c0_11] : memref<8x8x128xf32, #tpu.memory_space<vmem>>, vector<1x8x128xf32>
    %15 = vector.shape_cast %14 : vector<1x8x128xf32> to vector<8x128xf32>
    %16 = arith.addf %15, %12 : vector<8x128xf32>
    %17 = math.tanh %16 : vector<8x128xf32>
    %c2_i32 = arith.constant 2 : i32
    %c0_12 = arith.constant 0 : index
    %c0_13 = arith.constant 0 : index
    %18 = vector.load %arg3[%c0_12, %c0_13] : memref<128x128xf32, #tpu.memory_space<vmem>>, vector<128x128xf32>
    %cst_14 = arith.constant dense<0.000000e+00> : vector<8x128xf32>
    %19 = tpu.matmul %17, %18, %cst_14 {dimension_numbers = #tpu.dot_dimension_numbers<[1], [0], [0], [1], [0, 0, 1, 1], [], []>} : vector<8x128xf32>, vector<128x128xf32>, vector<8x128xf32> -> vector<8x128xf32>
    %20 = arith.index_cast %c2_i32 : i32 to index
    %c0_15 = arith.constant 0 : index
    %c0_16 = arith.constant 0 : index
    %21 = vector.load %arg2[%20, %c0_15, %c0_16] : memref<8x8x128xf32, #tpu.memory_space<vmem>>, vector<1x8x128xf32>
    %22 = vector.shape_cast %21 : vector<1x8x128xf32> to vector<8x128xf32>
    %23 = arith.addf %22, %19 : vector<8x128xf32>
    %24 = math.tanh %23 : vector<8x128xf32>
    %c3_i32 = arith.constant 3 : i32
    %c0_17 = arith.constant 0 : index
    %c0_18 = arith.constant 0 : index
    %25 = vector.load %arg3[%c0_17, %c0_18] : memref<128x128xf32, #tpu.memory_space<vmem>>, vector<128x128xf32>
    %cst_19 = arith.constant dense<0.000000e+00> : vector<8x128xf32>
    %26 = tpu.matmul %24, %25, %cst_19 {dimension_numbers = #tpu.dot_dimension_numbers<[1], [0], [0], [1], [0, 0, 1, 1], [], []>} : vector<8x128xf32>, vector<128x128xf32>, vector<8x128xf32> -> vector<8x128xf32>
    %27 = arith.index_cast %c3_i32 : i32 to index
    %c0_20 = arith.constant 0 : index
    %c0_21 = arith.constant 0 : index
    %28 = vector.load %arg2[%27, %c0_20, %c0_21] : memref<8x8x128xf32, #tpu.memory_space<vmem>>, vector<1x8x128xf32>
    %29 = vector.shape_cast %28 : vector<1x8x128xf32> to vector<8x128xf32>
    %30 = arith.addf %29, %26 : vector<8x128xf32>
    %31 = math.tanh %30 : vector<8x128xf32>
    %c4_i32 = arith.constant 4 : i32
    %c0_22 = arith.constant 0 : index
    %c0_23 = arith.constant 0 : index
    %32 = vector.load %arg3[%c0_22, %c0_23] : memref<128x128xf32, #tpu.memory_space<vmem>>, vector<128x128xf32>
    %cst_24 = arith.constant dense<0.000000e+00> : vector<8x128xf32>
    %33 = tpu.matmul %31, %32, %cst_24 {dimension_numbers = #tpu.dot_dimension_numbers<[1], [0], [0], [1], [0, 0, 1, 1], [], []>} : vector<8x128xf32>, vector<128x128xf32>, vector<8x128xf32> -> vector<8x128xf32>
    %34 = arith.index_cast %c4_i32 : i32 to index
    %c0_25 = arith.constant 0 : index
    %c0_26 = arith.constant 0 : index
    %35 = vector.load %arg2[%34, %c0_25, %c0_26] : memref<8x8x128xf32, #tpu.memory_space<vmem>>, vector<1x8x128xf32>
    %36 = vector.shape_cast %35 : vector<1x8x128xf32> to vector<8x128xf32>
    %37 = arith.addf %36, %33 : vector<8x128xf32>
    %38 = math.tanh %37 : vector<8x128xf32>
    %c5_i32 = arith.constant 5 : i32
    %c0_27 = arith.constant 0 : index
    %c0_28 = arith.constant 0 : index
    %39 = vector.load %arg3[%c0_27, %c0_28] : memref<128x128xf32, #tpu.memory_space<vmem>>, vector<128x128xf32>
    %cst_29 = arith.constant dense<0.000000e+00> : vector<8x128xf32>
    %40 = tpu.matmul %38, %39, %cst_29 {dimension_numbers = #tpu.dot_dimension_numbers<[1], [0], [0], [1], [0, 0, 1, 1], [], []>} : vector<8x128xf32>, vector<128x128xf32>, vector<8x128xf32> -> vector<8x128xf32>
    %41 = arith.index_cast %c5_i32 : i32 to index
    %c0_30 = arith.constant 0 : index
    %c0_31 = arith.constant 0 : index
    %42 = vector.load %arg2[%41, %c0_30, %c0_31] : memref<8x8x128xf32, #tpu.memory_space<vmem>>, vector<1x8x128xf32>
    %43 = vector.shape_cast %42 : vector<1x8x128xf32> to vector<8x128xf32>
    %44 = arith.addf %43, %40 : vector<8x128xf32>
    %45 = math.tanh %44 : vector<8x128xf32>
    %c6_i32 = arith.constant 6 : i32
    %c0_32 = arith.constant 0 : index
    %c0_33 = arith.constant 0 : index
    %46 = vector.load %arg3[%c0_32, %c0_33] : memref<128x128xf32, #tpu.memory_space<vmem>>, vector<128x128xf32>
    %cst_34 = arith.constant dense<0.000000e+00> : vector<8x128xf32>
    %47 = tpu.matmul %45, %46, %cst_34 {dimension_numbers = #tpu.dot_dimension_numbers<[1], [0], [0], [1], [0, 0, 1, 1], [], []>} : vector<8x128xf32>, vector<128x128xf32>, vector<8x128xf32> -> vector<8x128xf32>
    %48 = arith.index_cast %c6_i32 : i32 to index
    %c0_35 = arith.constant 0 : index
    %c0_36 = arith.constant 0 : index
    %49 = vector.load %arg2[%48, %c0_35, %c0_36] : memref<8x8x128xf32, #tpu.memory_space<vmem>>, vector<1x8x128xf32>
    %50 = vector.shape_cast %49 : vector<1x8x128xf32> to vector<8x128xf32>
    %51 = arith.addf %50, %47 : vector<8x128xf32>
    %52 = math.tanh %51 : vector<8x128xf32>
    %c7_i32 = arith.constant 7 : i32
    %c0_37 = arith.constant 0 : index
    %c0_38 = arith.constant 0 : index
    %53 = vector.load %arg3[%c0_37, %c0_38] : memref<128x128xf32, #tpu.memory_space<vmem>>, vector<128x128xf32>
    %cst_39 = arith.constant dense<0.000000e+00> : vector<8x128xf32>
    %54 = tpu.matmul %52, %53, %cst_39 {dimension_numbers = #tpu.dot_dimension_numbers<[1], [0], [0], [1], [0, 0, 1, 1], [], []>} : vector<8x128xf32>, vector<128x128xf32>, vector<8x128xf32> -> vector<8x128xf32>
    %55 = arith.index_cast %c7_i32 : i32 to index
    %c0_40 = arith.constant 0 : index
    %c0_41 = arith.constant 0 : index
    %56 = vector.load %arg2[%55, %c0_40, %c0_41] : memref<8x8x128xf32, #tpu.memory_space<vmem>>, vector<1x8x128xf32>
    %57 = vector.shape_cast %56 : vector<1x8x128xf32> to vector<8x128xf32>
    %58 = arith.addf %57, %54 : vector<8x128xf32>
    %59 = math.tanh %58 : vector<8x128xf32>
    %c8_i32 = arith.constant 8 : i32
    %c0_42 = arith.constant 0 : index
    %c0_43 = arith.constant 0 : index
    %60 = vector.load %arg5[%c0_42, %c0_43] : memref<8x128xf32, #tpu.memory_space<vmem>>, vector<8x128xf32>
    tpu.vector_store %arg5[%c0_42, %c0_43], %59 {strides = array<i32>} : memref<8x128xf32, #tpu.memory_space<vmem>>, vector<8x128xf32>,
    %c1_i32_44 = arith.constant 1 : i32
    %61 = arith.cmpi eq, %arg1, %c1_i32_44 : i32
    %62 = arith.extui %61 : i1 to i32
    %c0_i32_45 = arith.constant 0 : i32
    %63 = arith.cmpi ne, %62, %c0_i32_45 : i32
    scf.if %63 {
      %c0_46 = arith.constant 0 : index
      %c0_47 = arith.constant 0 : index
      %64 = vector.load %arg4[%c0_46, %c0_47] : memref<8x128xf32, #tpu.memory_space<vmem>>, vector<8x128xf32>
      tpu.vector_store %arg4[%c0_46, %c0_47], %59 {strides = array<i32>} : memref<8x128xf32, #tpu.memory_space<vmem>>, vector<8x128xf32>,
    } else {
    }
    return
  }
  func.func @transform_0(%arg0: i32, %arg1: i32) -> (i32, i32, i32) {
    %c0_i32 = arith.constant 0 : i32
    %c0_i32_0 = arith.constant 0 : i32
    return %arg1, %arg0, %c0_i32 : i32, i32, i32
  }
  func.func @transform_1(%arg0: i32, %arg1: i32) -> (i32, i32) {
    %c0_i32 = arith.constant 0 : i32
    %c0_i32_0 = arith.constant 0 : i32
    %c0_i32_1 = arith.constant 0 : i32
    return %c0_i32, %c0_i32_0 : i32, i32
  }
  func.func @transform_2(%arg0: i32, %arg1: i32) -> (i32, i32) {
    %c0_i32 = arith.constant 0 : i32
    %c0_i32_0 = arith.constant 0 : i32
    return %arg0, %c0_i32 : i32, i32
  }
}

</mosaic_0001>

<bundles_post_ra>
// kernel: rnn_language_model.3
= control target key start
LH: loop header
LB: loop body
LE: loop exit
PB: predicated region body
PF: predicated region fallthrough
CT: control target
= control target key end

     0   :  { %s295_s0 = inlined_call_operand.vmem [shape: f32[16,128], index: 0, kind: input, shape index: {}]   ;;  %s296_s1 = inlined_call_operand.vmem [shape: f32[128,128], index: 1, kind: input, shape index: {}]   ;;  %s297_s2 = inlined_call_operand.vmem [shape: f32[1,128], index: 2, kind: input, shape index: {}]   ;;  %s298_s3 = inlined_call_operand.hbm [shape: f32[16,128], index: 3, kind: output, shape index: {}]  }
   0x1   :  { %v32_v0 = vld [vmem:[%s296_s1 + $0x78] sm:$0xff]  ;;  %v31_v1 = vld [vmem:[%s296_s1 + $0x70] sm:$0xff]  ;;  %v30_v2 = vld [vmem:[%s296_s1 + $0x68] sm:$0xff] }
   0x2   :  { %152 = vmatprep.subr.mxu0 %v32_v0  ;;  %v29_v3 = vld [vmem:[%s296_s1 + $0x60] sm:$0xff]  ;;  %v28_v5 = vld [vmem:[%s296_s1 + $0x58] sm:$0xff] }
   0x3   :  { %153 = vmatpush3.msra.mxu0 %v32_v0  ;;  %v15_v4 = vld [vmem:[%s295_s0] sm:$0xff] }
   0x4   :  { %154 = vmatprep.subr.mxu0 %v31_v1  ;;  %184 = vmatprep.mubr.f32.mxu0 %v15_v4 }
   0x5   :  { %155 = vmatpush3.msra.mxu0 %v31_v1 }
   0x6   :  { %156 = vmatprep.subr.mxu0 %v30_v2 }
   0x7   :  { %157 = vmatpush3.msra.mxu0 %v30_v2 }
   0x8   :  { %8 = vsyncpa [#allocation3], 0  ;;  %158 = vmatprep.subr.mxu0 %v29_v3  ;;  %v27_v6 = vld [vmem:[%s296_s1 + $0x50] sm:$0xff]  ;;  %v26_v7 = vld [vmem:[%s296_s1 + $0x48] sm:$0xff]  ;;  %s212_s23 = smov [#allocation2]  }
   0x9   :  { %159 = vmatpush3.msra.mxu0 %v29_v3  ;;  %v25_v8 = vld [vmem:[%s296_s1 + $0x40] sm:$0xff]  ;;  %v24_v9 = vld [vmem:[%s296_s1 + $0x38] sm:$0xff]  ;;  %v23_v10 = vld [vmem:[%s296_s1 + $0x30] sm:$0xff]  ;;  %s122_s24 = sshll.u32 %s212_s23, 4  ;;  %s123_s24 = int_to_ptr.vmem [resolvable:$true] %s122_s24 }
   0xa   :  { %160 = vmatprep.subr.mxu0 %v28_v5  ;;  %v22_v11 = vld [vmem:[%s296_s1 + $0x28] sm:$0xff]  ;;  %v21_v12 = vld [vmem:[%s296_s1 + $0x20] sm:$0xff]  ;;  %v20_v13 = vld [vmem:[%s296_s1 + $0x18] sm:$0xff]  ;;  %p195_p1 = scmp.lt.s32.totalorder %s123_s24, %s123_s24 }
   0xb   :  { %161 = vmatpush3.msra.mxu0 %v28_v5  ;;  %v19_v14 = vld [vmem:[%s296_s1 + $0x10] sm:$0xff]  ;;  %v18_v15 = vld [vmem:[%s296_s1 + $0x8] sm:$0xff]  ;;  %v17_v16 = vld [vmem:[%s296_s1] sm:$0xff]  ;;  %s190_s1 = scalar_lea.vmem %s123_s24, 256 }
   0xc   :  { %162 = vmatprep.subr.mxu0 %v27_v6  ;;  %v16_v17 = vld [vmem:[%s295_s0 + $0x8] sm:$0xff]  ;;  %v133_v18 = vld [vmem:[%s297_s2] ss:$0 sm:$0xff]  ;;  %p191_p0 = scmp.ne.s32.totalorder %s123_s24, %s190_s1  ;;  %p196_p2 = scmp.lt.s32.totalorder %s190_s1, %s190_s1 }
   0xd   :  { %163 = vmatpush3.msra.mxu0 %v27_v6 }
   0xe   :  { %164 = vmatprep.subr.mxu0 %v26_v7  ;;  %p197_p3 = por %p196_p2, %p195_p1 }
   0xf   :  { %165 = vmatpush3.msra.mxu0 %v26_v7 }
  0x10   :  { %166 = vmatprep.subr.mxu0 %v25_v8  ;;  %p198_p4 = pnand %p197_p3, %p191_p0 }
  0x11   :  { %167 = vmatpush3.msra.mxu0 %v25_v8 }
  0x12   :  { %168 = vmatprep.subr.mxu0 %v24_v9 }
  0x13   :  { %169 = vmatpush3.msra.mxu0 %v24_v9 }
  0x14   :  { %170 = vmatprep.subr.mxu0 %v23_v10 }
  0x15   :  { %171 = vmatpush3.msra.mxu0 %v23_v10 }
  0x16   :  { %172 = vmatprep.subr.mxu0 %v22_v11 }
  0x17   :  { %173 = vmatpush3.msra.mxu0 %v22_v11 }
  0x18   :  { %174 = vmatprep.subr.mxu0 %v21_v12 }
  0x19   :  { %175 = vmatpush3.msra.mxu0 %v21_v12 }
  0x1a   :  { %176 = vmatprep.subr.mxu0 %v20_v13 }
  0x1b   :  { %177 = vmatpush3.msra.mxu0 %v20_v13 }
  0x1c   :  { %178 = vmatprep.subr.mxu0 %v19_v14 }
  0x1d   :  { %179 = vmatpush3.msra.mxu0 %v19_v14 }
  0x1e   :  { %180 = vmatprep.subr.mxu0 %v18_v15 }
  0x1f   :  { %181 = vmatpush3.msra.mxu0 %v18_v15 }
  0x20   :  { %182 = vmatprep.subr.mxu0 %v17_v16 }
  0x21   :  { %183 = vmatpush3.msra.mxu0 %v17_v16 }
  0x22   :  { %185 = vmatmul.mubr.f32.vlgmr.msra.gmra.mxu0 %v16_v17 }
  0xe2   :  { %v186_v19 = vpop.f32.mrf.mxu0 }
  0xe3   :  { %v112_v20 = vadd.f32 %v186_v19, %v133_v18 }
  0xe4   :  { %v106_v21 = vpop.f32.mrf.mxu0 }
  0xe5   :  { %116 = vst [vmem:[#allocation2 + $0x8] sm:$0xff] %v112_v20  ;;  %v107_v22 = vadd.f32 %v133_v18, %v106_v21 }
  0xe7   :  { %115 = vst [vmem:[#allocation2] sm:$0xff] %v107_v22 }
  0xe8   :  { %201 = shalt.err (!%p198_p4)
}
  0xe9   :  { %s213_s0 = smov 128   ;;  %s214_s25 = smov 8  }
  0xea   :  { %128 = dma.vmem_to_hbm [thread:$0]  %s123_s24, 256, %s298_s3, [#allocation3], %s213_s0, %s213_s0, %s214_s25  }
  0xeb   :  { %210 = dma.done.wait [#allocation3], 256  }
  0xec   :  { %211 = vsyncadd [#allocation3], 4294967040 }
  0xed   :  { %132 = vsyncpa [#allocation3], 1 }

// kernel: rnn_language_model.2
= control target key start
LH: loop header
LB: loop body
LE: loop exit
PB: predicated region body
PF: predicated region fallthrough
CT: control target
= control target key end

     0   :  { %s1502_s9 = smov 0   ;;  %s1504_s10 = smov 0   ;;  %s1958_s0 = inlined_call_operand.vmem [shape: f32[16,16,128], index: 0, kind: input, shape index: {}]   ;;  %s1959_s1 = inlined_call_operand.vmem [shape: f32[128,128], index: 1, kind: input, shape index: {}]   ;;  %s1960_s2 = inlined_call_operand.vmem [shape: f32[16,128], index: 2, kind: output, shape index: {}]  }
   0x1   :  { %s1506_s11 = smov 0   ;;  %s1508_s12 = smov 0  }
   0x2   :  { %s1510_s13 = smov 0   ;;  %s1512_s14 = smov 0  }
   0x3   :  { %s1514_s15 = smov 0  }
   0x4 LB: > { %s21_s16 = sadd.s32 1, %s1474_s13  ;;  %s24_s17 = sadd.s32 1, %s1478_s14  ;;  %s1482_s15 = sphi %s1514_s15, %s12_s15   ;;  %s1478_s14 = sphi %s1512_s14, %s1966_s14   ;;  %s1474_s13 = sphi %s1510_s13, %s1965_s13   ;;  %s1470_s12 = sphi %s1508_s12, %s1964_s12   ;;  %s1466_s11 = sphi %s1506_s11, %s1963_s11   ;;  %s1462_s10 = sphi %s1504_s10, %s1962_s10   ;;  %s1458_s9 = sphi %s1502_s9, %s1961_s9  }
   0x5   : > { %p22_p0 = scmp.ge.s32.totalorder %s21_s16, 2  ;;  %p40_p1 = scmp.ne.s32.totalorder %s1462_s10, %s1458_s9 }
   0x6   : > { %p41_p2 = scmp.eq.s32.totalorder %s1482_s15, 0  ;;  %s33_s21 = sadd.s32 1, %s1462_s10 }
   0x7   : > { %s1968_s16 = smov (%p22_p0, %s21_s16), 0  ;;  %s1970_s17 = smov (!%p22_p0, %s24_s17), %s1478_s14 }
   0x8   : > { %p42_p3 = por %p41_p2, %p40_p1  ;;  %p26_p4 = scmp.ge.s32.totalorder %s1970_s17, 2 }
   0x9   : > { %s28_s18 = ssub.s32 %s1474_s13, %s1968_s16  ;;  %p917_p6 = scmp.ge.s32.totalorder %s1482_s15, 4 }
   0xa   : > { %s1972_s17 = smov (%p26_p4, %s1970_s17), 0 }
   0xb   : > { %s29_s19 = ssub.s32 %s1478_s14, %s1972_s17  ;;  %116 = sbr.rel (%p917_p6) target bundleno = 26 (0x1a), region = 20 }
   0xc   : > { %s30_s20 = sor.u32 %s29_s19, %s28_s18 }
   0xd   : > { %p31_p5 = scmp.eq.s32.totalorder %s30_s20, 0 }
   0xf   : > { %s1553_s22 = scalar_select %p31_p5, %s1462_s10, %s33_s21  }
  0x10   : > { %119 = sbr.rel (!%p42_p3) target bundleno = 26 (0x1a), region = 24  ;;  %s121_s23 = sand.u32 (%p42_p3), 1, %s1462_s10  }
  0x11   : > { %s936_s24 = sshll.u32 (%p42_p3), %s1474_s13, 4  ;;  %s918_s25 = sshll.u32 (%p42_p3), %s121_s23, 6 }
  0x12   : > { %s126_s26 = sadd.s32 (%p42_p3), %s1478_s14, %s936_s24  ;;  %s123_s3 = scalar_lea.vmem (%p42_p3), [#allocation3], %s918_s25 }
  0x13   : > { %s921_s27 = sshll.u32 (%p42_p3), %s126_s26, 3 }
  0x14   : > { %s128_s30 = scalar_lea.vmem (%p42_p3), %s1958_s0, %s921_s27 }
  0x15   : > { %v171_v0 = vld [vmem:[%s128_s30] sm:$0xff]  ;;  %v173_v1 = vld [vmem:[%s128_s30 + $0x10] sm:$0xff] }
  0x16   : > { %v175_v2 = vld [vmem:[%s128_s30 + $0x20] sm:$0xff]  ;;  %172 = vst [vmem:[%s123_s3] sm:$0xff] %v171_v0  ;;  %174 = vst [vmem:[%s123_s3 + $0x8] sm:$0xff] %v173_v1  ;;  %v177_v3 = vld [vmem:[%s128_s30 + $0x30] sm:$0xff] }
  0x17   : > { %176 = vst [vmem:[%s123_s3 + $0x10] sm:$0xff] %v175_v2  ;;  %v179_v4 = vld [vmem:[%s128_s30 + $0x40] sm:$0xff]  ;;  %v181_v5 = vld [vmem:[%s128_s30 + $0x50] sm:$0xff]  ;;  %178 = vst [vmem:[%s123_s3 + $0x18] sm:$0xff] %v177_v3 }
  0x18   : > { %180 = vst [vmem:[%s123_s3 + $0x20] sm:$0xff] %v179_v4  ;;  %182 = vst [vmem:[%s123_s3 + $0x28] sm:$0xff] %v181_v5  ;;  %v183_v6 = vld [vmem:[%s128_s30 + $0x60] sm:$0xff]  ;;  %v185_v7 = vld [vmem:[%s128_s30 + $0x70] sm:$0xff] }
  0x19   : > { %184 = vst [vmem:[%s123_s3 + $0x30] sm:$0xff] %v183_v6  ;;  %186 = vst [vmem:[%s123_s3 + $0x38] sm:$0xff] %v185_v7 }
  0x1a PF: > { %p922_p7 = scmp.ge.s32.totalorder %s1482_s15, 1  ;;  %p191_p8 = scmp.lt.s32.totalorder %s1482_s15, 5 }
  0x1c   : > { %p192_p9 = pnand %p922_p7, %p191_p8 }
  0x1d   : > { %s198_s4 = sand.u32 (!%p192_p9), 1, %s1458_s9   ;;  %p219_p10 = scmp.lt.s32.totalorder (!%p192_p9), %s1470_s12, 1 }
  0x1e   : > { %195 = sbr.rel (%p192_p9) target bundleno = 1749 (0x6d5), region = 62  ;;  %s923_s5 = sshll.u32 (!%p192_p9), %s198_s4, 6 }
  0x1f   : > { %s1572_s19 = scalar_lea.vmem (!%p192_p9), [#allocation3], %s923_s5  ;;  %p925_p11 = scmp.ne.s32.totalorder (!%p192_p9), %s1466_s11, 0 }
  0x23   : > { %s1974_s12 = smov (!%p219_p10, %s1470_s12), 1  ;;  %226 = sbr.rel (%p925_p11) target bundleno = 42 (0x2a), region = 70 }
  0x24   : > { %s924_s6 = sshll.u32 %s1974_s12, 3 }
  0x25   : > { %s1570_s18 = scalar_lea.vmem %s1960_s2, %s924_s6 }
  0x28   : > { %v1484_v8 = vmov 0.0  }
  0x29   : > { %227 = vst [vmem:[#allocation2] sm:$0xff] %v1484_v8 }
  0x2a PF: > { %v1578_v9 = vld [vmem:[%s1959_s1 + $0x78] sm:$0xff]  ;;  %v1485_v10 = vmov 0.0   ;;  %v1584_v11 = vld [vmem:[%s1959_s1 + $0x70] sm:$0xff]  ;;  %vm1486_vm0 = vmmov 0   ;;  %v1594_v12 = vld [vmem:[%s1959_s1 + $0x68] sm:$0xff]  ;;  %p933_p12 = scmp.ne.s32.totalorder %s1466_s11, 1 }
  0x2b   : > { %1073 = vmatprep.subr.mxu0 %v1485_v10  ;;  %1105 = vmatprep.mubr.msk.f32.mxu0 %vm1486_vm0, %v1485_v10  ;;  %v1603_v13 = vld [vmem:[%s1959_s1 + $0x60] sm:$0xff]  ;;  %v1612_v14 = vld [vmem:[%s1959_s1 + $0x58] sm:$0xff]  ;;  %v1621_v15 = vld [vmem:[%s1959_s1 + $0x50] sm:$0xff] }
  0x2c   : > { %1074 = vmatpush3.msra.mxu0 %v1578_v9  ;;  %1108 = vmatprep.subr.mxu1 %v1485_v10  ;;  %v1630_v16 = vld [vmem:[%s1959_s1 + $0x48] sm:$0xff]  ;;  %v1639_v17 = vld [vmem:[%s1959_s1 + $0x40] sm:$0xff]  ;;  %v1648_v18 = vld [vmem:[%s1959_s1 + $0x38] sm:$0xff] }
  0x2d   : > { %1075 = vmatprep.subr.mxu0 %v1485_v10  ;;  %1109 = vmatpush3.msra.mxu1 %v1578_v9  ;;  %v1657_v19 = vld [vmem:[%s1959_s1 + $0x30] sm:$0xff]  ;;  %v1666_v20 = vld [vmem:[%s1959_s1 + $0x28] sm:$0xff]  ;;  %v1675_v21 = vld [vmem:[%s1959_s1 + $0x20] sm:$0xff] }
  0x2e   : > { %1076 = vmatpush3.msra.mxu0 %v1584_v11  ;;  %1110 = vmatprep.subr.mxu1 %v1485_v10  ;;  %v1684_v22 = vld [vmem:[%s1959_s1 + $0x18] sm:$0xff]  ;;  %v1693_v23 = vld [vmem:[%s1959_s1 + $0x10] sm:$0xff]  ;;  %v1702_v24 = vld [vmem:[%s1959_s1 + $0x8] sm:$0xff] }
  0x2f   : > { %1077 = vmatprep.subr.mxu0 %v1485_v10  ;;  %1111 = vmatpush3.msra.mxu1 %v1584_v11  ;;  %v1711_v25 = vld [vmem:[%s1959_s1] sm:$0xff]  ;;  %v315_v27 = vld [vmem:[%s1572_s19] sm:$0xff]  ;;  %v926_v32 = vld [vmem:[%s1572_s19 + $0x8] sm:$0xff] }
  0x30   : > { %1078 = vmatpush3.msra.mxu0 %v1594_v12  ;;  %1112 = vmatprep.subr.mxu1 %v1485_v10  ;;  %v228_v26 = vld [vmem:[#allocation2] sm:$0xff]  ;;  %v927_v37 = vld [vmem:[%s1572_s19 + $0x10] sm:$0xff]  ;;  %v929_v47 = vld [vmem:[%s1572_s19 + $0x20] sm:$0xff] }
  0x31   : > { %1079 = vmatprep.subr.mxu0 %v1485_v10  ;;  %1113 = vmatpush3.msra.mxu1 %v1594_v12  ;;  %v928_v42 = vld [vmem:[%s1572_s19 + $0x18] sm:$0xff]  ;;  %v930_v52 = vld [vmem:[%s1572_s19 + $0x28] sm:$0xff]  ;;  %v931_v57 = vld [vmem:[%s1572_s19 + $0x30] sm:$0xff] }
  0x32   : > { %1080 = vmatpush3.msra.mxu0 %v1603_v13  ;;  %1114 = vmatprep.subr.mxu1 %v1485_v10  ;;  %v932_v62 = vld [vmem:[%s1572_s19 + $0x38] sm:$0xff] }
  0x33   : > { %1081 = vmatprep.subr.mxu0 %v1485_v10  ;;  %1115 = vmatpush3.msra.mxu1 %v1603_v13 }
  0x34   : > { %1082 = vmatpush3.msra.mxu0 %v1612_v14  ;;  %1116 = vmatprep.subr.mxu1 %v1485_v10 }
  0x35   : > { %1083 = vmatprep.subr.mxu0 %v1485_v10  ;;  %1117 = vmatpush3.msra.mxu1 %v1612_v14 }
  0x36   : > { %1084 = vmatpush3.msra.mxu0 %v1621_v15  ;;  %1118 = vmatprep.subr.mxu1 %v1485_v10 }
  0x37   : > { %1085 = vmatprep.subr.mxu0 %v1485_v10  ;;  %1119 = vmatpush3.msra.mxu1 %v1621_v15 }
  0x38   : > { %1086 = vmatpush3.msra.mxu0 %v1630_v16  ;;  %1120 = vmatprep.subr.mxu1 %v1485_v10 }
  0x39   : > { %1087 = vmatprep.subr.mxu0 %v1485_v10  ;;  %1121 = vmatpush3.msra.mxu1 %v1630_v16 }
  0x3a   : > { %1088 = vmatpush3.msra.mxu0 %v1639_v17  ;;  %1122 = vmatprep.subr.mxu1 %v1485_v10 }
  0x3b   : > { %1089 = vmatprep.subr.mxu0 %v1485_v10  ;;  %1123 = vmatpush3.msra.mxu1 %v1639_v17 }
  0x3c   : > { %1090 = vmatpush3.msra.mxu0 %v1648_v18  ;;  %1124 = vmatprep.subr.mxu1 %v1485_v10 }
  0x3d   : > { %1091 = vmatprep.subr.mxu0 %v1485_v10  ;;  %1125 = vmatpush3.msra.mxu1 %v1648_v18 }
  0x3e   : > { %1092 = vmatpush3.msra.mxu0 %v1657_v19  ;;  %1126 = vmatprep.subr.mxu1 %v1485_v10 }
  0x3f   : > { %1093 = vmatprep.subr.mxu0 %v1485_v10  ;;  %1127 = vmatpush3.msra.mxu1 %v1657_v19 }
  0x40   : > { %1094 = vmatpush3.msra.mxu0 %v1666_v20  ;;  %1128 = vmatprep.subr.mxu1 %v1485_v10 }
  0x41   : > { %1095 = vmatprep.subr.mxu0 %v1485_v10  ;;  %1129 = vmatpush3.msra.mxu1 %v1666_v20 }
  0x42   : > { %1096 = vmatpush3.msra.mxu0 %v1675_v21  ;;  %1130 = vmatprep.subr.mxu1 %v1485_v10 }
  0x43   : > { %1097 = vmatprep.subr.mxu0 %v1485_v10  ;;  %1131 = vmatpush3.msra.mxu1 %v1675_v21 }
  0x44   : > { %1098 = vmatpush3.msra.mxu0 %v1684_v22  ;;  %1132 = vmatprep.subr.mxu1 %v1485_v10 }
  0x45   : > { %1099 = vmatprep.subr.mxu0 %v1485_v10  ;;  %1133 = vmatpush3.msra.mxu1 %v1684_v22 }
  0x46   : > { %1100 = vmatpush3.msra.mxu0 %v1693_v23  ;;  %1134 = vmatprep.subr.mxu1 %v1485_v10 }
  0x47   : > { %1101 = vmatprep.subr.mxu0 %v1485_v10  ;;  %1135 = vmatpush3.msra.mxu1 %v1693_v23 }
  0x48   : > { %1102 = vmatpush3.msra.mxu0 %v1702_v24  ;;  %1136 = vmatprep.subr.mxu1 %v1485_v10 }
  0x49   : > { %1103 = vmatprep.subr.mxu0 %v1485_v10  ;;  %1137 = vmatpush3.msra.mxu1 %v1702_v24 }
  0x4a   : > { %1104 = vmatpush3.msra.mxu0 %v1711_v25  ;;  %1138 = vmatprep.subr.mxu1 %v1485_v10 }
  0x4b   : > { %1106 = vmatmul.mubr.f32.vlgmr.msra.gmra.mxu0 %v228_v26  ;;  %1139 = vmatpush3.msra.mxu1 %v1711_v25 }
  0x4c   : > { %1140 = vmatprep.mubr.msk.f32.mxu1 %vm1486_vm0, %v1485_v10  ;;  %1143 = vmatprep.subr.mxu0 %v1485_v10 }
  0x4d   : > { %1144 = vmatpush3.msra.mxu0 %v1578_v9  ;;  %1175 = vmatprep.mubr.msk.f32.mxu0 %vm1486_vm0, %v1485_v10 }
  0x4e   : > { %1145 = vmatprep.subr.mxu0 %v1485_v10  ;;  %1178 = vmatprep.subr.mxu1 %v1485_v10 }
  0x4f   : > { %1146 = vmatpush3.msra.mxu0 %v1584_v11 }
  0x50   : > { %1147 = vmatprep.subr.mxu0 %v1485_v10 }
  0x51   : > { %1148 = vmatpush3.msra.mxu0 %v1594_v12 }
  0x52   : > { %1149 = vmatprep.subr.mxu0 %v1485_v10 }
  0x53   : > { %1150 = vmatpush3.msra.mxu0 %v1603_v13 }
  0x54   : > { %1151 = vmatprep.subr.mxu0 %v1485_v10 }
  0x55   : > { %1152 = vmatpush3.msra.mxu0 %v1612_v14 }
  0x56   : > { %1153 = vmatprep.subr.mxu0 %v1485_v10 }
  0x57   : > { %1154 = vmatpush3.msra.mxu0 %v1621_v15 }
  0x58   : > { %1155 = vmatprep.subr.mxu0 %v1485_v10 }
  0x59   : > { %1156 = vmatpush3.msra.mxu0 %v1630_v16 }
  0x5a   : > { %1157 = vmatprep.subr.mxu0 %v1485_v10 }
  0x5b   : > { %1158 = vmatpush3.msra.mxu0 %v1639_v17 }
  0x5c   : > { %1159 = vmatprep.subr.mxu0 %v1485_v10 }
  0x5d   : > { %1160 = vmatpush3.msra.mxu0 %v1648_v18 }
  0x5e   : > { %1161 = vmatprep.subr.mxu0 %v1485_v10 }
  0x5f   : > { %1162 = vmatpush3.msra.mxu0 %v1657_v19 }
  0x60   : > { %1163 = vmatprep.subr.mxu0 %v1485_v10 }
  0x61   : > { %1164 = vmatpush3.msra.mxu0 %v1666_v20 }
  0x62   : > { %1165 = vmatprep.subr.mxu0 %v1485_v10 }
  0x63   : > { %1166 = vmatpush3.msra.mxu0 %v1675_v21 }
  0x64   : > { %1167 = vmatprep.subr.mxu0 %v1485_v10 }
  0x65   : > { %1168 = vmatpush3.msra.mxu0 %v1684_v22 }
  0x66   : > { %1169 = vmatprep.subr.mxu0 %v1485_v10 }
  0x67   : > { %1170 = vmatpush3.msra.mxu0 %v1693_v23 }
  0x68   : > { %1171 = vmatprep.subr.mxu0 %v1485_v10 }
  0x69   : > { %1172 = vmatpush3.msra.mxu0 %v1702_v24 }
  0x6a   : > { %1173 = vmatprep.subr.mxu0 %v1485_v10 }
  0x6b   : > { %1174 = vmatpush3.msra.mxu0 %v1711_v25 }
  0x6c   : > { %1213 = vmatprep.subr.mxu0 %v1485_v10 }
 0x10b   : > { %v311_v28 = vpop.f32.mrf.mxu0 }
 0x10c   : > { %v316_v29 = vadd.f32 %v315_v27, %v311_v28 }
 0x10d   : > { %v1107_v30 = vpop.f32.mrf.mxu0 }
 0x10e   : > { %1412 = vtanh.f32 %v316_v29 }
 0x11b   : > { %v1413_v31 = vpop.eup %1412 }
 0x11c   : > { %1141 = vmatmul.mubr.f32.vlgmr.msra.gmra.mxu1 %v1413_v31 }
 0x11d   : > { %1179 = vmatpush3.msra.mxu1 %v1578_v9  ;;  %1210 = vmatprep.mubr.msk.f32.mxu1 %vm1486_vm0, %v1485_v10 }
 0x11e   : > { %1180 = vmatprep.subr.mxu1 %v1485_v10 }
 0x11f   : > { %1181 = vmatpush3.msra.mxu1 %v1584_v11 }
 0x120   : > { %1182 = vmatprep.subr.mxu1 %v1485_v10 }
 0x121   : > { %1183 = vmatpush3.msra.mxu1 %v1594_v12 }
 0x122   : > { %1184 = vmatprep.subr.mxu1 %v1485_v10 }
 0x123   : > { %1185 = vmatpush3.msra.mxu1 %v1603_v13 }
 0x124   : > { %1186 = vmatprep.subr.mxu1 %v1485_v10 }
 0x125   : > { %1187 = vmatpush3.msra.mxu1 %v1612_v14 }
 0x126   : > { %1188 = vmatprep.subr.mxu1 %v1485_v10 }
 0x127   : > { %1189 = vmatpush3.msra.mxu1 %v1621_v15 }
 0x128   : > { %1190 = vmatprep.subr.mxu1 %v1485_v10 }
 0x129   : > { %1191 = vmatpush3.msra.mxu1 %v1630_v16 }
 0x12a   : > { %1192 = vmatprep.subr.mxu1 %v1485_v10 }
 0x12b   : > { %1193 = vmatpush3.msra.mxu1 %v1639_v17 }
 0x12c   : > { %1194 = vmatprep.subr.mxu1 %v1485_v10 }
 0x12d   : > { %1195 = vmatpush3.msra.mxu1 %v1648_v18 }
 0x12e   : > { %1196 = vmatprep.subr.mxu1 %v1485_v10 }
 0x12f   : > { %1197 = vmatpush3.msra.mxu1 %v1657_v19 }
 0x130   : > { %1198 = vmatprep.subr.mxu1 %v1485_v10 }
 0x131   : > { %1199 = vmatpush3.msra.mxu1 %v1666_v20 }
 0x132   : > { %1200 = vmatprep.subr.mxu1 %v1485_v10 }
 0x133   : > { %1201 = vmatpush3.msra.mxu1 %v1675_v21 }
 0x134   : > { %1202 = vmatprep.subr.mxu1 %v1485_v10 }
 0x135   : > { %1203 = vmatpush3.msra.mxu1 %v1684_v22 }
 0x136   : > { %1204 = vmatprep.subr.mxu1 %v1485_v10 }
 0x137   : > { %1205 = vmatpush3.msra.mxu1 %v1693_v23 }
 0x138   : > { %1206 = vmatprep.subr.mxu1 %v1485_v10 }
 0x139   : > { %1207 = vmatpush3.msra.mxu1 %v1702_v24 }
 0x13a   : > { %1208 = vmatprep.subr.mxu1 %v1485_v10 }
 0x13b   : > { %1209 = vmatpush3.msra.mxu1 %v1711_v25 }
 0x13c   : > { %1248 = vmatprep.subr.mxu1 %v1485_v10 }
 0x1dc   : > { %v384_v33 = vpop.f32.mrf.mxu1 }
 0x1dd   : > { %v390_v34 = vadd.f32 %v926_v32, %v384_v33 }
 0x1de   : > { %v1142_v35 = vpop.f32.mrf.mxu1 }
 0x1df   : > { %1414 = vtanh.f32 %v390_v34 }
 0x1ec   : > { %v1415_v36 = vpop.eup %1414 }
 0x1ed   : > { %1176 = vmatmul.mubr.f32.vlgmr.msra.gmra.mxu0 %v1415_v36 }
 0x1ee   : > { %1214 = vmatpush3.msra.mxu0 %v1578_v9  ;;  %1245 = vmatprep.mubr.msk.f32.mxu0 %vm1486_vm0, %v1485_v10 }
 0x1ef   : > { %1215 = vmatprep.subr.mxu0 %v1485_v10 }
 0x1f0   : > { %1216 = vmatpush3.msra.mxu0 %v1584_v11 }
 0x1f1   : > { %1217 = vmatprep.subr.mxu0 %v1485_v10 }
 0x1f2   : > { %1218 = vmatpush3.msra.mxu0 %v1594_v12 }
 0x1f3   : > { %1219 = vmatprep.subr.mxu0 %v1485_v10 }
 0x1f4   : > { %1220 = vmatpush3.msra.mxu0 %v1603_v13 }
 0x1f5   : > { %1221 = vmatprep.subr.mxu0 %v1485_v10 }
 0x1f6   : > { %1222 = vmatpush3.msra.mxu0 %v1612_v14 }
 0x1f7   : > { %1223 = vmatprep.subr.mxu0 %v1485_v10 }
 0x1f8   : > { %1224 = vmatpush3.msra.mxu0 %v1621_v15 }
 0x1f9   : > { %1225 = vmatprep.subr.mxu0 %v1485_v10 }
 0x1fa   : > { %1226 = vmatpush3.msra.mxu0 %v1630_v16 }
 0x1fb   : > { %1227 = vmatprep.subr.mxu0 %v1485_v10 }
 0x1fc   : > { %1228 = vmatpush3.msra.mxu0 %v1639_v17 }
 0x1fd   : > { %1229 = vmatprep.subr.mxu0 %v1485_v10 }
 0x1fe   : > { %1230 = vmatpush3.msra.mxu0 %v1648_v18 }
 0x1ff   : > { %1231 = vmatprep.subr.mxu0 %v1485_v10 }
 0x200   : > { %1232 = vmatpush3.msra.mxu0 %v1657_v19 }
 0x201   : > { %1233 = vmatprep.subr.mxu0 %v1485_v10 }
 0x202   : > { %1234 = vmatpush3.msra.mxu0 %v1666_v20 }
 0x203   : > { %1235 = vmatprep.subr.mxu0 %v1485_v10 }
 0x204   : > { %1236 = vmatpush3.msra.mxu0 %v1675_v21 }
 0x205   : > { %1237 = vmatprep.subr.mxu0 %v1485_v10 }
 0x206   : > { %1238 = vmatpush3.msra.mxu0 %v1684_v22 }
 0x207   : > { %1239 = vmatprep.subr.mxu0 %v1485_v10 }
 0x208   : > { %1240 = vmatpush3.msra.mxu0 %v1693_v23 }
 0x209   : > { %1241 = vmatprep.subr.mxu0 %v1485_v10 }
 0x20a   : > { %1242 = vmatpush3.msra.mxu0 %v1702_v24 }
 0x20b   : > { %1243 = vmatprep.subr.mxu0 %v1485_v10 }
 0x20c   : > { %1244 = vmatpush3.msra.mxu0 %v1711_v25 }
 0x20d   : > { %1283 = vmatprep.subr.mxu0 %v1485_v10 }
 0x2ad   : > { %v458_v38 = vpop.f32.mrf.mxu0 }
 0x2ae   : > { %v464_v39 = vadd.f32 %v927_v37, %v458_v38 }
 0x2af   : > { %v1177_v40 = vpop.f32.mrf.mxu0 }
 0x2b0   : > { %1416 = vtanh.f32 %v464_v39 }
 0x2bd   : > { %v1417_v41 = vpop.eup %1416 }
 0x2be   : > { %1211 = vmatmul.mubr.f32.vlgmr.msra.gmra.mxu1 %v1417_v41 }
 0x2bf   : > { %1249 = vmatpush3.msra.mxu1 %v1578_v9  ;;  %1280 = vmatprep.mubr.msk.f32.mxu1 %vm1486_vm0, %v1485_v10 }
 0x2c0   : > { %1250 = vmatprep.subr.mxu1 %v1485_v10 }
 0x2c1   : > { %1251 = vmatpush3.msra.mxu1 %v1584_v11 }
 0x2c2   : > { %1252 = vmatprep.subr.mxu1 %v1485_v10 }
 0x2c3   : > { %1253 = vmatpush3.msra.mxu1 %v1594_v12 }
 0x2c4   : > { %1254 = vmatprep.subr.mxu1 %v1485_v10 }
 0x2c5   : > { %1255 = vmatpush3.msra.mxu1 %v1603_v13 }
 0x2c6   : > { %1256 = vmatprep.subr.mxu1 %v1485_v10 }
 0x2c7   : > { %1257 = vmatpush3.msra.mxu1 %v1612_v14 }
 0x2c8   : > { %1258 = vmatprep.subr.mxu1 %v1485_v10 }
 0x2c9   : > { %1259 = vmatpush3.msra.mxu1 %v1621_v15 }
 0x2ca   : > { %1260 = vmatprep.subr.mxu1 %v1485_v10 }
 0x2cb   : > { %1261 = vmatpush3.msra.mxu1 %v1630_v16 }
 0x2cc   : > { %1262 = vmatprep.subr.mxu1 %v1485_v10 }
 0x2cd   : > { %1263 = vmatpush3.msra.mxu1 %v1639_v17 }
 0x2ce   : > { %1264 = vmatprep.subr.mxu1 %v1485_v10 }
 0x2cf   : > { %1265 = vmatpush3.msra.mxu1 %v1648_v18 }
 0x2d0   : > { %1266 = vmatprep.subr.mxu1 %v1485_v10 }
 0x2d1   : > { %1267 = vmatpush3.msra.mxu1 %v1657_v19 }
 0x2d2   : > { %1268 = vmatprep.subr.mxu1 %v1485_v10 }
 0x2d3   : > { %1269 = vmatpush3.msra.mxu1 %v1666_v20 }
 0x2d4   : > { %1270 = vmatprep.subr.mxu1 %v1485_v10 }
 0x2d5   : > { %1271 = vmatpush3.msra.mxu1 %v1675_v21 }
 0x2d6   : > { %1272 = vmatprep.subr.mxu1 %v1485_v10 }
 0x2d7   : > { %1273 = vmatpush3.msra.mxu1 %v1684_v22 }
 0x2d8   : > { %1274 = vmatprep.subr.mxu1 %v1485_v10 }
 0x2d9   : > { %1275 = vmatpush3.msra.mxu1 %v1693_v23 }
 0x2da   : > { %1276 = vmatprep.subr.mxu1 %v1485_v10 }
 0x2db   : > { %1277 = vmatpush3.msra.mxu1 %v1702_v24 }
 0x2dc   : > { %1278 = vmatprep.subr.mxu1 %v1485_v10 }
 0x2dd   : > { %1279 = vmatpush3.msra.mxu1 %v1711_v25 }
 0x2de   : > { %1318 = vmatprep.subr.mxu1 %v1485_v10 }
 0x37e   : > { %v532_v43 = vpop.f32.mrf.mxu1 }
 0x37f   : > { %v538_v44 = vadd.f32 %v928_v42, %v532_v43 }
 0x380   : > { %v1212_v45 = vpop.f32.mrf.mxu1 }
 0x381   : > { %1418 = vtanh.f32 %v538_v44 }
 0x38e   : > { %v1419_v46 = vpop.eup %1418 }
 0x38f   : > { %1246 = vmatmul.mubr.f32.vlgmr.msra.gmra.mxu0 %v1419_v46 }
 0x390   : > { %1284 = vmatpush3.msra.mxu0 %v1578_v9  ;;  %1315 = vmatprep.mubr.msk.f32.mxu0 %vm1486_vm0, %v1485_v10 }
 0x391   : > { %1285 = vmatprep.subr.mxu0 %v1485_v10 }
 0x392   : > { %1286 = vmatpush3.msra.mxu0 %v1584_v11 }
 0x393   : > { %1287 = vmatprep.subr.mxu0 %v1485_v10 }
 0x394   : > { %1288 = vmatpush3.msra.mxu0 %v1594_v12 }
 0x395   : > { %1289 = vmatprep.subr.mxu0 %v1485_v10 }
 0x396   : > { %1290 = vmatpush3.msra.mxu0 %v1603_v13 }
 0x397   : > { %1291 = vmatprep.subr.mxu0 %v1485_v10 }
 0x398   : > { %1292 = vmatpush3.msra.mxu0 %v1612_v14 }
 0x399   : > { %1293 = vmatprep.subr.mxu0 %v1485_v10 }
 0x39a   : > { %1294 = vmatpush3.msra.mxu0 %v1621_v15 }
 0x39b   : > { %1295 = vmatprep.subr.mxu0 %v1485_v10 }
 0x39c   : > { %1296 = vmatpush3.msra.mxu0 %v1630_v16 }
 0x39d   : > { %1297 = vmatprep.subr.mxu0 %v1485_v10 }
 0x39e   : > { %1298 = vmatpush3.msra.mxu0 %v1639_v17 }
 0x39f   : > { %1299 = vmatprep.subr.mxu0 %v1485_v10 }
 0x3a0   : > { %1300 = vmatpush3.msra.mxu0 %v1648_v18 }
 0x3a1   : > { %1301 = vmatprep.subr.mxu0 %v1485_v10 }
 0x3a2   : > { %1302 = vmatpush3.msra.mxu0 %v1657_v19 }
 0x3a3   : > { %1303 = vmatprep.subr.mxu0 %v1485_v10 }
 0x3a4   : > { %1304 = vmatpush3.msra.mxu0 %v1666_v20 }
 0x3a5   : > { %1305 = vmatprep.subr.mxu0 %v1485_v10 }
 0x3a6   : > { %1306 = vmatpush3.msra.mxu0 %v1675_v21 }
 0x3a7   : > { %1307 = vmatprep.subr.mxu0 %v1485_v10 }
 0x3a8   : > { %1308 = vmatpush3.msra.mxu0 %v1684_v22 }
 0x3a9   : > { %1309 = vmatprep.subr.mxu0 %v1485_v10 }
 0x3aa   : > { %1310 = vmatpush3.msra.mxu0 %v1693_v23 }
 0x3ab   : > { %1311 = vmatprep.subr.mxu0 %v1485_v10 }
 0x3ac   : > { %1312 = vmatpush3.msra.mxu0 %v1702_v24 }
 0x3ad   : > { %1313 = vmatprep.subr.mxu0 %v1485_v10 }
 0x3ae   : > { %1314 = vmatpush3.msra.mxu0 %v1711_v25 }
 0x44f   : > { %v606_v48 = vpop.f32.mrf.mxu0 }
 0x450   : > { %v612_v49 = vadd.f32 %v929_v47, %v606_v48 }
 0x451   : > { %v1247_v50 = vpop.f32.mrf.mxu0 }
 0x452   : > { %1420 = vtanh.f32 %v612_v49 }
 0x45f   : > { %v1421_v51 = vpop.eup %1420 }
 0x460   : > { %1281 = vmatmul.mubr.f32.vlgmr.msra.gmra.mxu1 %v1421_v51 }
 0x461   : > { %1319 = vmatpush3.msra.mxu1 %v1578_v9  ;;  %1350 = vmatprep.mubr.msk.f32.mxu1 %vm1486_vm0, %v1485_v10 }
 0x462   : > { %1320 = vmatprep.subr.mxu1 %v1485_v10 }
 0x463   : > { %1321 = vmatpush3.msra.mxu1 %v1584_v11 }
 0x464   : > { %1322 = vmatprep.subr.mxu1 %v1485_v10 }
 0x465   : > { %1323 = vmatpush3.msra.mxu1 %v1594_v12 }
 0x466   : > { %1324 = vmatprep.subr.mxu1 %v1485_v10 }
 0x467   : > { %1325 = vmatpush3.msra.mxu1 %v1603_v13 }
 0x468   : > { %1326 = vmatprep.subr.mxu1 %v1485_v10 }
 0x469   : > { %1327 = vmatpush3.msra.mxu1 %v1612_v14 }
 0x46a   : > { %1328 = vmatprep.subr.mxu1 %v1485_v10 }
 0x46b   : > { %1329 = vmatpush3.msra.mxu1 %v1621_v15 }
 0x46c   : > { %1330 = vmatprep.subr.mxu1 %v1485_v10 }
 0x46d   : > { %1331 = vmatpush3.msra.mxu1 %v1630_v16 }
 0x46e   : > { %1332 = vmatprep.subr.mxu1 %v1485_v10 }
 0x46f   : > { %1333 = vmatpush3.msra.mxu1 %v1639_v17 }
 0x470   : > { %1334 = vmatprep.subr.mxu1 %v1485_v10 }
 0x471   : > { %1335 = vmatpush3.msra.mxu1 %v1648_v18 }
 0x472   : > { %1336 = vmatprep.subr.mxu1 %v1485_v10 }
 0x473   : > { %1337 = vmatpush3.msra.mxu1 %v1657_v19 }
 0x474   : > { %1338 = vmatprep.subr.mxu1 %v1485_v10 }
 0x475   : > { %1339 = vmatpush3.msra.mxu1 %v1666_v20 }
 0x476   : > { %1340 = vmatprep.subr.mxu1 %v1485_v10 }
 0x477   : > { %1341 = vmatpush3.msra.mxu1 %v1675_v21 }
 0x478   : > { %1342 = vmatprep.subr.mxu1 %v1485_v10 }
 0x479   : > { %1343 = vmatpush3.msra.mxu1 %v1684_v22 }
 0x47a   : > { %1344 = vmatprep.subr.mxu1 %v1485_v10 }
 0x47b   : > { %1345 = vmatpush3.msra.mxu1 %v1693_v23 }
 0x47c   : > { %1346 = vmatprep.subr.mxu1 %v1485_v10 }
 0x47d   : > { %1347 = vmatpush3.msra.mxu1 %v1702_v24 }
 0x47e   : > { %1348 = vmatprep.subr.mxu1 %v1485_v10 }
 0x47f   : > { %1349 = vmatpush3.msra.mxu1 %v1711_v25 }
 0x520   : > { %v680_v53 = vpop.f32.mrf.mxu1 }
 0x521   : > { %v686_v54 = vadd.f32 %v930_v52, %v680_v53 }
 0x522   : > { %v1282_v55 = vpop.f32.mrf.mxu1 }
 0x523   : > { %1422 = vtanh.f32 %v686_v54 }
 0x530   : > { %v1423_v56 = vpop.eup %1422 }
 0x531   : > { %1316 = vmatmul.mubr.f32.vlgmr.msra.gmra.mxu0 %v1423_v56 }
 0x5f1   : > { %v754_v58 = vpop.f32.mrf.mxu0 }
 0x5f2   : > { %v760_v59 = vadd.f32 %v931_v57, %v754_v58 }
 0x5f3   : > { %v1317_v60 = vpop.f32.mrf.mxu0 }
 0x5f4   : > { %1424 = vtanh.f32 %v760_v59 }
 0x601   : > { %v1425_v61 = vpop.eup %1424 }
 0x602   : > { %1351 = vmatmul.mubr.f32.vlgmr.msra.gmra.mxu1 %v1425_v61 }
 0x6c2   : > { %v828_v63 = vpop.f32.mrf.mxu1 }
 0x6c3   : > { %v834_v0 = vadd.f32 %v932_v62, %v828_v63 }
 0x6c4   : > { %v1352_v1 = vpop.f32.mrf.mxu1 }
 0x6c5   : > { %1426 = vtanh.f32 %v834_v0 }
 0x6cf   : > { %840 = sbr.rel (%p933_p12) target bundleno = 1749 (0x6d5), region = 74 }
 0x6d2   : > { %v1427_v2 = vpop.eup %1426 }
 0x6d3   : > { %836 = vst [vmem:[#allocation2] sm:$0xff] %v1427_v2 }
 0x6d4   : > { %841 = vst [vmem:[%s1570_s18] sm:$0xff] %v1427_v2 }
 0x6d5 PF: > { %s12_s15 = sadd.s32 1, %s1482_s15   ;;  %s1961_s9 = smov %s1462_s10 }
 0x6d6   : > { %p9_p13 = scmp.ge.s32.totalorder %s12_s15, 6   ;;  %s1962_s10 = smov %s1553_s22 }
 0x6d7   : > { %s1963_s11 = smov %s1474_s13  ;;  %s1964_s12 = smov %s1478_s14 }
 0x6d8   : > { %s1965_s13 = smov %s1968_s16  ;;  %s1966_s14 = smov %s1972_s17 }
 0x6d9   :  { %11 = sbr.rel (!%p9_p13) target bundleno = 4 (0x4), region = 116 }

</bundles_post_ra>
